<compile_context>
chip_gen: v6e
topology: v6e:2x2x1
jax: 0.10.0
libtpu: 0.0.40
codegen_flags: <defaults>
</compile_context>

<pallas_src>
import functools

import jax
import jax.numpy as jnp
from jax import lax
from jax.experimental import pallas as pl
from jax.experimental.pallas import tpu as pltpu


def _conv1331_kernel(x_ref, w1_ref, b1_ref, w2_ref, b2_ref, o_ref, *, width):
    # x_ref:  (1, Cin, HW) VMEM  -- H*W on lanes, channels on sublanes
    # w1_ref: (3, Cm, Cin) VMEM  -- 1x3 conv taps (BN scale folded in)
    # b1_ref: (Cm, 1)      VMEM  -- folded conv-bias + BN bias
    # w2_ref: (3, Co, Cm)  VMEM  -- 3x1 conv taps (BN scale folded in)
    # b2_ref: (Co, 1)      VMEM
    # o_ref:  (1, Co, HW)  VMEM  -- lane-dense output (HW multiple of 128)
    f32 = jnp.float32
    hw = x_ref.shape[2]

    x = x_ref[0].astype(f32)                                    # (Cin, HW)

    # Boundary masks along the flattened H*W (lane) axis, built once as (1, HW)
    # row vectors; they broadcast over the small channel (sublane) dim.
    pos = jax.lax.broadcasted_iota(jnp.int32, (1, hw), 1)
    wpos = pos % width
    at_w0 = wpos == 0                    # w == 0     (left image edge)
    at_wl = wpos == width - 1            # w == W-1   (right image edge)
    at_h0 = pos < width                  # h == 0     (top image edge)
    at_hl = pos >= hw - width            # h == H-1   (bottom image edge)

    # ---- conv1: kernel (1,3), padding (0,1): taps are +/-1 lane shifts ------
    x_m1 = jnp.where(at_w0, 0.0, pltpu.roll(x, 1, 1))           # x[:, h, w-1]
    x_p1 = jnp.where(at_wl, 0.0, pltpu.roll(x, hw - 1, 1))      # x[:, h, w+1]

    y = jnp.dot(w1_ref[1], x, preferred_element_type=f32)
    y = y + jnp.dot(w1_ref[0], x_m1, preferred_element_type=f32)
    y = y + jnp.dot(w1_ref[2], x_p1, preferred_element_type=f32)
    y = jnp.maximum(y + b1_ref[...], 0.0)                       # ReLU, (Cm, HW)

    # ---- conv2: kernel (3,1), padding (1,0): taps are +/-W lane shifts ------
    y_m1 = jnp.where(at_h0, 0.0, pltpu.roll(y, width, 1))       # y[:, h-1, w]
    y_p1 = jnp.where(at_hl, 0.0, pltpu.roll(y, hw - width, 1))  # y[:, h+1, w]

    out = jnp.dot(w2_ref[1], y, preferred_element_type=f32)
    out = out + jnp.dot(w2_ref[0], y_m1, preferred_element_type=f32)
    out = out + jnp.dot(w2_ref[2], y_p1, preferred_element_type=f32)

    o_ref[0] = (out + b2_ref[...]).astype(o_ref.dtype)


def conv1331_forward(x, w1, b1, g1, beta1, m1, v1,
                     w2, b2, g2, beta2, m2, v2, eps=1e-5):
    """x: (N, Cin, H, W) f32.  w1: (Cm, Cin, 1, 3).  w2: (Co, Cm, 3, 1)."""
    N, Cin, H, W = x.shape
    Cm = w1.shape[0]
    Co = w2.shape[0]
    HW = H * W

    # Fold conv bias + eval-mode BN into effective per-tap weights / biases.
    s1 = (g1 / jnp.sqrt(v1 + eps)).astype(jnp.float32)
    s2 = (g2 / jnp.sqrt(v2 + eps)).astype(jnp.float32)
    # (Cm, Cin, 1, 3) -> (3, Cm, Cin): w1_eff[t, cm, ci] = w1[cm, ci, 0, t]*s1[cm]
    w1_eff = jnp.transpose(w1[:, :, 0, :] * s1[:, None, None],
                           (2, 0, 1)).astype(jnp.float32)
    b1_eff = ((b1 - m1) * s1 + beta1).reshape(Cm, 1).astype(jnp.float32)
    # (Co, Cm, 3, 1) -> (3, Co, Cm)
    w2_eff = jnp.transpose(w2[:, :, :, 0] * s2[:, None, None],
                           (2, 0, 1)).astype(jnp.float32)
    b2_eff = ((b2 - m2) * s2 + beta2).reshape(Co, 1).astype(jnp.float32)

    # NCHW -> (N, C, H*W): contiguous trailing-dim merge (no data movement).
    x_flat = x.reshape(N, Cin, HW)

    kernel = functools.partial(_conv1331_kernel, width=W)
    out_flat = pl.pallas_call(
        kernel,
        out_shape=jax.ShapeDtypeStruct((N, Co, HW), x.dtype),
        grid_spec=pltpu.PrefetchScalarGridSpec(
            num_scalar_prefetch=0,
            grid=(N,),
            in_specs=[
                pl.BlockSpec((1, Cin, HW), lambda n: (n, 0, 0)),
                pl.BlockSpec((3, Cm, Cin), lambda n: (0, 0, 0)),
                pl.BlockSpec((Cm, 1), lambda n: (0, 0)),
                pl.BlockSpec((3, Co, Cm), lambda n: (0, 0, 0)),
                pl.BlockSpec((Co, 1), lambda n: (0, 0)),
            ],
            out_specs=pl.BlockSpec((1, Co, HW), lambda n: (n, 0, 0)),
        ),
        # "parallel" batch axis: megacore / v7x 2-TC split across images.
        compiler_params=pltpu.CompilerParams(
            dimension_semantics=("parallel",)),
    )(x_flat, w1_eff, b1_eff, w2_eff, b2_eff)

    # (N, Co, H*W) -> NCHW: trailing-dim split (no data movement).
    return out_flat.reshape(N, Co, H, W)


def _reference(x, w1, b1, g1, beta1, m1, v1, w2, b2, g2, beta2, m2, v2, eps=1e-5):
    def bn(y, g, be, m, v):
        s = (g / jnp.sqrt(v + eps))[None, :, None, None]
        return (y - m[None, :, None, None]) * s + be[None, :, None, None]

    y = lax.conv_general_dilated(x, w1, (1, 1), ((0, 0), (1, 1)),
                                 dimension_numbers=("NCHW", "OIHW", "NCHW"))
    y = bn(y + b1[None, :, None, None], g1, beta1, m1, v1)
    y = jnp.maximum(y, 0.0)
    y = lax.conv_general_dilated(y, w2, (1, 1), ((1, 1), (0, 0)),
                                 dimension_numbers=("NCHW", "OIHW", "NCHW"))
    y = bn(y + b2[None, :, None, None], g2, beta2, m2, v2)
    return y


if __name__ == "__main__":
    N, Cin, Cout, H, W = 2, 4, 4, 16, 16   # in_channels == out_channels == 4
    key = jax.random.PRNGKey(0)
    ks = jax.random.split(key, 13)

    x = jax.random.normal(ks[0], (N, Cin, H, W), jnp.float32)
    # conv1: Conv2d(Cin, Cout, kernel=(1,3), padding=(0,1)) + BN
    w1 = jax.random.normal(ks[1], (Cout, Cin, 1, 3), jnp.float32) * 0.2
    b1 = jax.random.normal(ks[2], (Cout,), jnp.float32) * 0.1
    g1 = 1.0 + 0.1 * jax.random.normal(ks[3], (Cout,), jnp.float32)
    beta1 = 0.1 * jax.random.normal(ks[4], (Cout,), jnp.float32)
    m1 = 0.1 * jax.random.normal(ks[5], (Cout,), jnp.float32)
    v1 = 1.0 + 0.1 * jax.random.uniform(ks[6], (Cout,), jnp.float32)
    # conv2: Conv2d(Cout, Cout, kernel=(3,1), padding=(1,0)) + BN
    w2 = jax.random.normal(ks[7], (Cout, Cout, 3, 1), jnp.float32) * 0.2
    b2 = jax.random.normal(ks[8], (Cout,), jnp.float32) * 0.1
    g2 = 1.0 + 0.1 * jax.random.normal(ks[9], (Cout,), jnp.float32)
    beta2 = 0.1 * jax.random.normal(ks[10], (Cout,), jnp.float32)
    m2 = 0.1 * jax.random.normal(ks[11], (Cout,), jnp.float32)
    v2 = 1.0 + 0.1 * jax.random.uniform(ks[12], (Cout,), jnp.float32)

    out = conv1331_forward(x, w1, b1, g1, beta1, m1, v1,
                           w2, b2, g2, beta2, m2, v2)
    out = jax.block_until_ready(out)

    ref = _reference(x, w1, b1, g1, beta1, m1, v1, w2, b2, g2, beta2, m2, v2)
    assert out.shape == (N, Cout, H, W)
    assert jnp.max(jnp.abs(out - ref)) < 1e-4, "mismatch vs JAX reference"

    print("KERNEL_OK")
</pallas_src>

<mosaic_0001>
module attributes {stable_mosaic.version = 11 : i64} {
  func.func @_conv1331_kernel(%arg0: i32, %arg1: memref<1x4x256xf32, #tpu.memory_space<vmem>>, %arg2: memref<3x4x4xf32, #tpu.memory_space<vmem>>, %arg3: memref<4x1xf32, #tpu.memory_space<vmem>>, %arg4: memref<3x4x4xf32, #tpu.memory_space<vmem>>, %arg5: memref<4x1xf32, #tpu.memory_space<vmem>>, %arg6: memref<1x4x256xf32, #tpu.memory_space<vmem>>) attributes {dimension_semantics = [#tpu.dimension_semantics<parallel>], iteration_bounds = array<i64: 2>, scalar_prefetch = 0 : i64, scratch_operands = 0 : i64, tpu.core_type = #tpu.core_type<tc>, window_params = [{transform_indices = @transform_0, window_bounds = array<i64: 1, 4, 256>}, {pipeline_mode = #tpu.pipeline_mode<synchronous>, transform_indices = @transform_1, window_bounds = array<i64: 3, 4, 4>}, {pipeline_mode = #tpu.pipeline_mode<synchronous>, transform_indices = @transform_2, window_bounds = array<i64: 4, 1>}, {pipeline_mode = #tpu.pipeline_mode<synchronous>, transform_indices = @transform_3, window_bounds = array<i64: 3, 4, 4>}, {pipeline_mode = #tpu.pipeline_mode<synchronous>, transform_indices = @transform_4, window_bounds = array<i64: 4, 1>}, {transform_indices = @transform_5, window_bounds = array<i64: 1, 4, 256>}]} {
    %c0 = arith.constant 0 : index
    %c0_0 = arith.constant 0 : index
    %c0_1 = arith.constant 0 : index
    %0 = vector.load %arg1[%c0, %c0_0, %c0_1] : memref<1x4x256xf32, #tpu.memory_space<vmem>>, vector<1x4x256xf32>
    %1 = vector.shape_cast %0 : vector<1x4x256xf32> to vector<4x256xf32>
    %2 = tpu.iota {dimensions = array<i32: 1>} : vector<1x256xi32>
    %c16_i32 = arith.constant 16 : i32
    %c0_i32 = arith.constant 0 : i32
    %3 = arith.cmpi eq, %c16_i32, %c0_i32 : i32
    %c1_i32 = arith.constant 1 : i32
    %4 = arith.select %3, %c1_i32, %c16_i32 : i32
    %5 = vector.broadcast %4 : i32 to vector<1x256xi32>
    %6 = arith.remsi %2, %5 : vector<1x256xi32>
    %c0_i32_2 = arith.constant 0 : i32
    %7 = vector.broadcast %c0_i32_2 : i32 to vector<1x256xi32>
    %8 = arith.cmpi ne, %6, %7 : vector<1x256xi32>
    %c0_i32_3 = arith.constant 0 : i32
    %9 = vector.broadcast %c0_i32_3 : i32 to vector<1x256xi32>
    %10 = arith.cmpi slt, %6, %9 : vector<1x256xi32>
    %c0_i32_4 = arith.constant 0 : i32
    %11 = arith.cmpi slt, %4, %c0_i32_4 : i32
    %12 = vector.broadcast %11 : i1 to vector<1x256xi1>
    %13 = vector.broadcast %12 : vector<1x256xi1> to vector<1x256xi1>
    %14 = arith.xori %10, %13 : vector<1x256xi1>
    %15 = arith.andi %14, %8 : vector<1x256xi1>
    %16 = vector.broadcast %4 : i32 to vector<1x256xi32>
    %17 = arith.addi %6, %16 : vector<1x256xi32>
    %18 = arith.select %15, %17, %6 : vector<1x256xi1>, vector<1x256xi32>
    %c0_i32_5 = arith.constant 0 : i32
    %19 = vector.broadcast %c0_i32_5 : i32 to vector<1x256xi32>
    %20 = arith.cmpi eq, %18, %19 : vector<1x256xi32>
    %c15_i32 = arith.constant 15 : i32
    %21 = vector.broadcast %c15_i32 : i32 to vector<1x256xi32>
    %22 = arith.cmpi eq, %18, %21 : vector<1x256xi32>
    %c16_i32_6 = arith.constant 16 : i32
    %23 = vector.broadcast %c16_i32_6 : i32 to vector<1x256xi32>
    %24 = arith.cmpi slt, %2, %23 : vector<1x256xi32>
    %c240_i32 = arith.constant 240 : i32
    %25 = vector.broadcast %c240_i32 : i32 to vector<1x256xi32>
    %26 = arith.cmpi sge, %2, %25 : vector<1x256xi32>
    %c1_i32_7 = arith.constant 1 : i32
    %27 = tpu.dynamic_rotate %1 by %c1_i32_7 dim 1 : vector<4x256xf32>, i32 -> vector<4x256xf32>
    %cst = arith.constant 0.000000e+00 : f32
    %28 = vector.shape_cast %20 : vector<1x256xi1> to vector<1x256xi1>
    %29 = vector.broadcast %28 : vector<1x256xi1> to vector<4x256xi1>
    %30 = vector.broadcast %cst : f32 to vector<4x256xf32>
    %31 = arith.select %29, %30, %27 : vector<4x256xi1>, vector<4x256xf32>
    %c255_i32 = arith.constant 255 : i32
    %32 = tpu.dynamic_rotate %1 by %c255_i32 dim 1 : vector<4x256xf32>, i32 -> vector<4x256xf32>
    %cst_8 = arith.constant 0.000000e+00 : f32
    %33 = vector.shape_cast %22 : vector<1x256xi1> to vector<1x256xi1>
    %34 = vector.broadcast %33 : vector<1x256xi1> to vector<4x256xi1>
    %35 = vector.broadcast %cst_8 : f32 to vector<4x256xf32>
    %36 = arith.select %34, %35, %32 : vector<4x256xi1>, vector<4x256xf32>
    %c1 = arith.constant 1 : index
    %c0_9 = arith.constant 0 : index
    %c0_10 = arith.constant 0 : index
    %37 = vector.load %arg2[%c1, %c0_9, %c0_10] : memref<3x4x4xf32, #tpu.memory_space<vmem>>, vector<1x4x4xf32>
    %38 = vector.shape_cast %37 : vector<1x4x4xf32> to vector<4x4xf32>
    %cst_11 = arith.constant dense<0.000000e+00> : vector<4x256xf32>
    %39 = tpu.matmul %38, %1, %cst_11 {dimension_numbers = #tpu.dot_dimension_numbers<[1], [0], [0], [1], [0, 0, 1, 1], [], []>} : vector<4x4xf32>, vector<4x256xf32>, vector<4x256xf32> -> vector<4x256xf32>
    %c0_12 = arith.constant 0 : index
    %c0_13 = arith.constant 0 : index
    %c0_14 = arith.constant 0 : index
    %40 = vector.load %arg2[%c0_12, %c0_13, %c0_14] : memref<3x4x4xf32, #tpu.memory_space<vmem>>, vector<1x4x4xf32>
    %41 = vector.shape_cast %40 : vector<1x4x4xf32> to vector<4x4xf32>
    %cst_15 = arith.constant dense<0.000000e+00> : vector<4x256xf32>
    %42 = tpu.matmul %41, %31, %cst_15 {dimension_numbers = #tpu.dot_dimension_numbers<[1], [0], [0], [1], [0, 0, 1, 1], [], []>} : vector<4x4xf32>, vector<4x256xf32>, vector<4x256xf32> -> vector<4x256xf32>
    %43 = arith.addf %39, %42 : vector<4x256xf32>
    %c2 = arith.constant 2 : index
    %c0_16 = arith.constant 0 : index
    %c0_17 = arith.constant 0 : index
    %44 = vector.load %arg2[%c2, %c0_16, %c0_17] : memref<3x4x4xf32, #tpu.memory_space<vmem>>, vector<1x4x4xf32>
    %45 = vector.shape_cast %44 : vector<1x4x4xf32> to vector<4x4xf32>
    %cst_18 = arith.constant dense<0.000000e+00> : vector<4x256xf32>
    %46 = tpu.matmul %45, %36, %cst_18 {dimension_numbers = #tpu.dot_dimension_numbers<[1], [0], [0], [1], [0, 0, 1, 1], [], []>} : vector<4x4xf32>, vector<4x256xf32>, vector<4x256xf32> -> vector<4x256xf32>
    %47 = arith.addf %43, %46 : vector<4x256xf32>
    %c0_19 = arith.constant 0 : index
    %c0_20 = arith.constant 0 : index
    %48 = vector.load %arg3[%c0_19, %c0_20] : memref<4x1xf32, #tpu.memory_space<vmem>>, vector<4x1xf32>
    %49 = vector.broadcast %48 : vector<4x1xf32> to vector<4x256xf32>
    %50 = arith.addf %47, %49 : vector<4x256xf32>
    %cst_21 = arith.constant 0.000000e+00 : f32
    %51 = vector.broadcast %cst_21 : f32 to vector<4x256xf32>
    %52 = arith.maximumf %50, %51 : vector<4x256xf32>
    %c16_i32_22 = arith.constant 16 : i32
    %53 = tpu.dynamic_rotate %52 by %c16_i32_22 dim 1 : vector<4x256xf32>, i32 -> vector<4x256xf32>
    %cst_23 = arith.constant 0.000000e+00 : f32
    %54 = vector.shape_cast %24 : vector<1x256xi1> to vector<1x256xi1>
    %55 = vector.broadcast %54 : vector<1x256xi1> to vector<4x256xi1>
    %56 = vector.broadcast %cst_23 : f32 to vector<4x256xf32>
    %57 = arith.select %55, %56, %53 : vector<4x256xi1>, vector<4x256xf32>
    %c240_i32_24 = arith.constant 240 : i32
    %58 = tpu.dynamic_rotate %52 by %c240_i32_24 dim 1 : vector<4x256xf32>, i32 -> vector<4x256xf32>
    %cst_25 = arith.constant 0.000000e+00 : f32
    %59 = vector.shape_cast %26 : vector<1x256xi1> to vector<1x256xi1>
    %60 = vector.broadcast %59 : vector<1x256xi1> to vector<4x256xi1>
    %61 = vector.broadcast %cst_25 : f32 to vector<4x256xf32>
    %62 = arith.select %60, %61, %58 : vector<4x256xi1>, vector<4x256xf32>
    %c1_26 = arith.constant 1 : index
    %c0_27 = arith.constant 0 : index
    %c0_28 = arith.constant 0 : index
    %63 = vector.load %arg4[%c1_26, %c0_27, %c0_28] : memref<3x4x4xf32, #tpu.memory_space<vmem>>, vector<1x4x4xf32>
    %64 = vector.shape_cast %63 : vector<1x4x4xf32> to vector<4x4xf32>
    %cst_29 = arith.constant dense<0.000000e+00> : vector<4x256xf32>
    %65 = tpu.matmul %64, %52, %cst_29 {dimension_numbers = #tpu.dot_dimension_numbers<[1], [0], [0], [1], [0, 0, 1, 1], [], []>} : vector<4x4xf32>, vector<4x256xf32>, vector<4x256xf32> -> vector<4x256xf32>
    %c0_30 = arith.constant 0 : index
    %c0_31 = arith.constant 0 : index
    %c0_32 = arith.constant 0 : index
    %66 = vector.load %arg4[%c0_30, %c0_31, %c0_32] : memref<3x4x4xf32, #tpu.memory_space<vmem>>, vector<1x4x4xf32>
    %67 = vector.shape_cast %66 : vector<1x4x4xf32> to vector<4x4xf32>
    %cst_33 = arith.constant dense<0.000000e+00> : vector<4x256xf32>
    %68 = tpu.matmul %67, %57, %cst_33 {dimension_numbers = #tpu.dot_dimension_numbers<[1], [0], [0], [1], [0, 0, 1, 1], [], []>} : vector<4x4xf32>, vector<4x256xf32>, vector<4x256xf32> -> vector<4x256xf32>
    %69 = arith.addf %65, %68 : vector<4x256xf32>
    %c2_34 = arith.constant 2 : index
    %c0_35 = arith.constant 0 : index
    %c0_36 = arith.constant 0 : index
    %70 = vector.load %arg4[%c2_34, %c0_35, %c0_36] : memref<3x4x4xf32, #tpu.memory_space<vmem>>, vector<1x4x4xf32>
    %71 = vector.shape_cast %70 : vector<1x4x4xf32> to vector<4x4xf32>
    %cst_37 = arith.constant dense<0.000000e+00> : vector<4x256xf32>
    %72 = tpu.matmul %71, %62, %cst_37 {dimension_numbers = #tpu.dot_dimension_numbers<[1], [0], [0], [1], [0, 0, 1, 1], [], []>} : vector<4x4xf32>, vector<4x256xf32>, vector<4x256xf32> -> vector<4x256xf32>
    %73 = arith.addf %69, %72 : vector<4x256xf32>
    %c0_38 = arith.constant 0 : index
    %c0_39 = arith.constant 0 : index
    %74 = vector.load %arg5[%c0_38, %c0_39] : memref<4x1xf32, #tpu.memory_space<vmem>>, vector<4x1xf32>
    %75 = vector.broadcast %74 : vector<4x1xf32> to vector<4x256xf32>
    %76 = arith.addf %73, %75 : vector<4x256xf32>
    %c0_40 = arith.constant 0 : index
    %c0_41 = arith.constant 0 : index
    %c0_42 = arith.constant 0 : index
    %77 = vector.load %arg6[%c0_40, %c0_41, %c0_42] : memref<1x4x256xf32, #tpu.memory_space<vmem>>, vector<1x4x256xf32>
    %78 = vector.shape_cast %77 : vector<1x4x256xf32> to vector<4x256xf32>
    %79 = vector.shape_cast %76 : vector<4x256xf32> to vector<1x4x256xf32>
    tpu.vector_store %arg6[%c0_40, %c0_41, %c0_42], %79 {strides = array<i32>} : memref<1x4x256xf32, #tpu.memory_space<vmem>>, vector<1x4x256xf32>,
    return
  }
  func.func @transform_0(%arg0: i32) -> (i32, i32, i32) {
    %c0_i32 = arith.constant 0 : i32
    %c0_i32_0 = arith.constant 0 : i32
    %c0_i32_1 = arith.constant 0 : i32
    return %arg0, %c0_i32, %c0_i32_0 : i32, i32, i32
  }
  func.func @transform_1(%arg0: i32) -> (i32, i32, i32) {
    %c0_i32 = arith.constant 0 : i32
    %c0_i32_0 = arith.constant 0 : i32
    %c0_i32_1 = arith.constant 0 : i32
    %c0_i32_2 = arith.constant 0 : i32
    return %c0_i32, %c0_i32_0, %c0_i32_1 : i32, i32, i32
  }
  func.func @transform_2(%arg0: i32) -> (i32, i32) {
    %c0_i32 = arith.constant 0 : i32
    %c0_i32_0 = arith.constant 0 : i32
    %c0_i32_1 = arith.constant 0 : i32
    return %c0_i32, %c0_i32_0 : i32, i32
  }
  func.func @transform_3(%arg0: i32) -> (i32, i32, i32) {
    %c0_i32 = arith.constant 0 : i32
    %c0_i32_0 = arith.constant 0 : i32
    %c0_i32_1 = arith.constant 0 : i32
    %c0_i32_2 = arith.constant 0 : i32
    return %c0_i32, %c0_i32_0, %c0_i32_1 : i32, i32, i32
  }
  func.func @transform_4(%arg0: i32) -> (i32, i32) {
    %c0_i32 = arith.constant 0 : i32
    %c0_i32_0 = arith.constant 0 : i32
    %c0_i32_1 = arith.constant 0 : i32
    return %c0_i32, %c0_i32_0 : i32, i32
  }
  func.func @transform_5(%arg0: i32) -> (i32, i32, i32) {
    %c0_i32 = arith.constant 0 : i32
    %c0_i32_0 = arith.constant 0 : i32
    %c0_i32_1 = arith.constant 0 : i32
    return %arg0, %c0_i32, %c0_i32_0 : i32, i32, i32
  }
}

</mosaic_0001>

<bundles_post_ra>
// kernel: tpu_custom_call.1
= control target key start
LH: loop header
LB: loop body
LE: loop exit
PB: predicated region body
PF: predicated region fallthrough
CT: control target
= control target key end

     0   :  { %10 = vsyncpa [#allocation3], 0  ;;  %s1437_s0 = inlined_call_operand.hbm [shape: f32[2,4,256], index: 0, kind: input, shape index: {}]   ;;  %s1438_s1 = inlined_call_operand.hbm [shape: f32[3,4,4], index: 1, kind: input, shape index: {}]   ;;  %s1439_s2 = inlined_call_operand.vmem [shape: f32[4,1], index: 2, kind: input, shape index: {}]   ;;  %s1440_s3 = inlined_call_operand.vmem [shape: f32[3,4,4], index: 3, kind: input, shape index: {}]   ;;  %s1441_s4 = inlined_call_operand.vmem [shape: f32[4,1], index: 4, kind: input, shape index: {}]   ;;  %s1442_s5 = inlined_call_operand.hbm [shape: f32[2,4,256], index: 5, kind: output, shape index: {}]  }
   0x1   :  { %12 = vsyncpa [#allocation3 + $0x1], 0 }
   0x2   :  { %13 = vsyncpa [#allocation6], 0 }
   0x3   :  { %14 = vsyncpa [#allocation4], 0 }
   0x4   :  { %16 = vsyncpa [#allocation4 + $0x1], 0  ;;  %s1228_s18 = smov 0   ;;  %s1230_s19 = smov 0  }
   0x5   :  { %s1232_s20 = smov 0   ;;  %s1234_s21 = smov 0  }
   0x6 LB: > { %s1249_s22 = sadd.s32 4294967295, %s1185_s21   ;;  %s958_s23 = sadd.s32 4294967294, %s1185_s21   ;;  %s1185_s21 = sphi %s1234_s21, %s1464_s21   ;;  %s1181_s20 = sphi %s1232_s20, %s1463_s20   ;;  %s1177_s19 = sphi %s1230_s19, %s1462_s19   ;;  %s1173_s18 = sphi %s1228_s18, %s1461_s18  }
   0x7   : > { %p42_p0 = scmp.ne.s32.totalorder %s1177_s19, %s1173_s18  ;;  %p1443_p1 = scmp.eq.s32.totalorder %s1249_s22, 0 }
   0x8   : > { %p156_p3 = scmp.eq.s32.totalorder %s958_s23, 1  ;;  %p959_p5 = scmp.ge.s32.totalorder %s1185_s21, 1 }
   0x9   : > { %p1258_p4 = por %p1443_p1, %p42_p0  ;;  %p163_p7 = scmp.lt.s32.totalorder %s1185_s21, 3 }
   0xa   : > { %p1263_p6 = por %p156_p3, %p42_p0  ;;  %s1187_s27 = smov [#allocation5]  }
   0xb   : > { %s1447_s24 = scalar_select %p1258_p4, 1, 0 }
   0xc   : > { %s1448_s25 = scalar_select %p1263_p6, 1, 0 }
   0xd   : > { %p1268_p8 = pnand %p959_p5, %p163_p7  ;;  %s175_s28 = sshll.u32 %s1187_s27, 4  ;;  %s176_s28 = int_to_ptr.vmem [resolvable:$true] %s175_s28 }
   0xe   : > { %s1282_s30 = sadd.s32 1, %s1185_s21   ;;  %s29_s6 = sadd.s32 1, %s1181_s20 }
   0xf   : > { %s1449_s26 = scalar_select %p1268_p8, 1, 0 }
  0x10   : > { %p1004_p9 = pneg %p1268_p8  ;;  %s26_s7 = ssub.s32 %s1185_s21, %s1282_s30 }
  0x11   : > { %s1074_s8 = scalar_lea.vmem %s176_s28, 192  ;;  %p1082_p5 = scmp.lt.s32.totalorder %s176_s28, %s176_s28 }
  0x12   : > { %p1277_p11 = pnand %p1004_p9, %p1443_p1  ;;  %p1075_p13 = scmp.ne.s32.totalorder %s176_s28, %s1074_s8 }
  0x13   : > { %p1083_p7 = scmp.lt.s32.totalorder %s1074_s8, %s1074_s8 }
  0x14   : > { %p1065_p12 = pneg %p1277_p11 }
  0x15   : > { %p1084_p10 = por %p1083_p7, %p1082_p5 }
  0x16   : > { %p1077_p0 = pnand %p1075_p13, %p1065_p12 }
  0x18   : > { %p1078_p3 = pneg %p1077_p0 }
  0x1a   : > { %p1085_p2 = pnand %p1084_p10, %p1078_p3 }
  0x1c   : > { %1088 = shalt.err (!%p1085_p2)
}
  0x1d   : > { %s1188_s9 = smov 64   ;;  %s1189_s10 = smov 4  }
  0x1e   : > { %1007 = dma.hbm_to_vmem [thread:$0]  (!%p1277_p11), %s1438_s1, 192, %s176_s28, [#allocation6], %s1188_s9, %s1188_s9, %s1189_s10  }
  0x1f   : > { %p27_p9 = scmp.eq.s32.totalorder %s26_s7, 0  ;;  %p36_p12 = scmp.ne.s32.totalorder %s1181_s20, %s1177_s19 }
  0x20   : > { %p37_p10 = scmp.eq.s32.totalorder %s1185_s21, 0  ;;  %p1017_p2 = scmp.lt.s32.totalorder %s1185_s21, 2 }
  0x21   : > { %s1299_s13 = scalar_select %p27_p9, %s1181_s20, %s29_s6  }
  0x22   : > { %p38_p13 = por %p37_p10, %p36_p12  ;;  %p1451_p0 = scmp.eq.s32.totalorder %s1249_s22, 1 }
  0x23   : > { %s198_s15 = sand.u32 1, %s1181_s20   ;;  %s994_s16 = sshll.u32 %s1185_s21, 7 }
  0x24   : > { %p1303_p3 = por %p1451_p0, %p36_p12  ;;  %s962_s17 = sshll.u32 %s198_s15, 3 }
  0x25   : > { %s1312_s29 = scalar_lea.hbm %s1437_s0, %s994_s16  ;;  %s202_s28 = scalar_lea.vmem [#allocation2], %s962_s17 }
  0x26   : > { %s1452_s14 = scalar_select %p1303_p3, 1, 0 }
  0x27   : > { %s210_s6 = sshll.u32 %s202_s28, 4  ;;  %p1314_p11 = pnand %p1017_p2, %p38_p13  ;;  %s211_s6 = int_to_ptr.vmem [resolvable:$true] %s210_s6 }
  0x28   : > { %s199_s8 = scalar_lea.sflag [#allocation3], %s198_s15  ;;  %s1089_s9 = scalar_lea.hbm %s1312_s29, 128 }
  0x29   : > { %p1090_p5 = scmp.ne.s32.totalorder %s1312_s29, %s1089_s9  ;;  %p1091_p7 = pneg %p1314_p11 }
  0x2a   : > { %s1094_s12 = scalar_lea.hbm %s1437_s0, 256  ;;  %p1095_p10 = scmp.lt.s32.totalorder %s1312_s29, %s1437_s0 }
  0x2b   : > { %p1092_p9 = pnand %p1091_p7, %p1090_p5  ;;  %p1096_p2 = scmp.lt.s32.totalorder %s1094_s12, %s1089_s9 }
  0x2d   : > { %p1093_p12 = pneg %p1092_p9  ;;  %p1097_p13 = por %p1096_p2, %p1095_p10 }
  0x2f   : > { %p1098_p0 = pnand %p1097_p13, %p1093_p12 }
  0x31   : > { %1101 = shalt.err (!%p1098_p0)
}
  0x32   : > { %s1102_s23 = scalar_lea.vmem %s211_s6, 128  ;;  %s1190_s15 = smov [#allocation2]  }
  0x33   : > { %p1103_p1 = scmp.ne.s32.totalorder %s211_s6, %s1102_s23  ;;  %s1107_s27 = sshll.u32 %s1190_s15, 4  ;;  %s1108_s27 = int_to_ptr.vmem [resolvable:$false] %s1107_s27 }
  0x34   : > { %s1109_s28 = scalar_lea.vmem %s1108_s27, 256  ;;  %p1110_p5 = scmp.lt.s32.totalorder %s211_s6, %s1108_s27 }
  0x35   : > { %p1105_p6 = pnand %p1103_p1, %p1091_p7  ;;  %p1111_p9 = scmp.lt.s32.totalorder %s1109_s28, %s1102_s23 }
  0x37   : > { %p1106_p3 = pneg %p1105_p6  ;;  %p1112_p4 = por %p1111_p9, %p1110_p5 }
  0x39   : > { %p1113_p8 = pnand %p1112_p4, %p1106_p3 }
  0x3b   : > { %1116 = shalt.err (!%p1113_p8)
}
  0x3c   : > { %1011 = dma.hbm_to_vmem [thread:$0]  (!%p1314_p11), %s1312_s29, 128, %s211_s6, %s199_s8  }
  0x3d   : > { %p1454_p12 = scmp.ne.s32.totalorder %s1449_s26, 0 }
  0x3e   : > { %s1335_s9 = sand.u32 (!%p1454_p12), 1, %s1177_s19   ;;  %p1455_p1 = scmp.ne.s32.totalorder (!%p1454_p12), %s1447_s24, 0 }
  0x3f   : > { %219 = sbr.rel (%p1454_p12) target bundleno = 741 (0x2e5), region = 40  ;;  %s966_s10 = sshll.u32 (!%p1454_p12), %s1335_s9, 3 }
  0x40   : > { %s222_s11 = scalar_lea.sflag (!%p1454_p12), [#allocation3], %s1335_s9  ;;  %s225_s12 = scalar_lea.vmem (!%p1454_p12), [#allocation2], %s966_s10 }
  0x44   : > { %1160 = dma.done.wait (%p1455_p1), %s222_s11, 128  }
  0x45   : > { %1162 = vsyncadd (%p1455_p1), %s222_s11, 4294967168  ;;  %p1456_p4 = scmp.eq.s32.totalorder %s1249_s22, 0 }
  0x47   : > { %1164 = dma.done.wait (%p1456_p4), [#allocation6], 192   ;;  %p1457_p6 = pmov %p1456_p4 }
  0x48   : > { %v1191_v0 = vmov 0.0   ;;  %v256_v1 = vld [vmem:[%s225_s12] sm:$0xff]  ;;  %vm328_vm0 = vcmask 1043456   ;;  %s1192_s26 = smov 127   ;;  %s1193_s29 = smov 1   ;;  %v1194_v3 = vmov 0   ;;  %v257_v6 = vlaneseq }
  0x49   : > { %1166 = vsyncadd (%p1457_p6), [#allocation6], 4294967104  ;;  %399 = vmatprep.mubr.f32.mxu0 %v1191_v0  ;;  %477 = vmatprep.mubr.f32.mxu1 %v1191_v0  ;;  %v293_v2 = vcombine.high %v256_v1, %v256_v1  ;;  %vm324_vm1 = vcmask 31744   ;;  %v322_v4 = vld [vmem:[#allocation5 + $0x4] sm:$0xf]  ;;  %s1195_s7 = smov 112  }
  0x4a   : > { %308 = vrot.lane.b32.xlu1 %v256_v1, %s1192_s26  ;;  %295 = vrot.lane.b32.xlu0 %v256_v1, %s1193_s29  ;;  %v568_v5 = vld [vmem:[%s1439_s2] sm:$0xf]  ;;  %v1358_v7 = vand.u32 127, %v257_v6  ;;  %v323_v21 = vld [vmem:[#allocation5] sm:$0xf]  ;;  %s1196_s8 = smov 16  }
  0x4b   : > { %1061 = vset.pattern.permute.xlu0 %v1194_v3  ;;  %972 = vmatprep.subr.msk.mxu1 %vm328_vm0, %v293_v2  ;;  %v485_v24 = vld [vmem:[#allocation5 + $0x8] sm:$0xf]  ;;  %v850_v40 = vld [vmem:[%s1441_s4] sm:$0xf]  ;;  %v978_v41 = vld [vmem:[%s1440_s3 + $0x4] sm:$0xf] }
  0x4c   : > { %973 = vmatpush1.msk.msra.mxu1 %vm328_vm0, %v256_v1  ;;  %v1361_v8 = vadd.s32 128, %v1358_v7  ;;  %v264_v9 = vand.u32 15, %v1358_v7  ;;  %vm312_vm2 = vcmp.lt.s32.totalorder %v1358_v7, 127  ;;  %vm299_vm3 = vcmp.lt.s32.totalorder %v1358_v7, 1  ;;  %v605_v46 = vld [vmem:[%s1440_s3] sm:$0xf] }
  0x4d   : > { %974 = vmatmul.mubr.msk.f32.vlgmr.msra.gmra.mxu1 %vm324_vm1, %v322_v4  ;;  %vm288_vm8 = vcmp.lt.s32.totalorder %v1358_v7, 16  ;;  %vm594_vm9 = vcmp.lt.s32.totalorder %v1358_v7, 112  ;;  %v985_v52 = vld [vmem:[%s1440_s3 + $0x8] sm:$0xf]  ;;  %s864_s16 = scalar_lea.sflag [#allocation4], %s1335_s9  ;;  %p1458_p3 = scmp.ne.s32.totalorder %s1452_s14, 0 }
  0x4e   : > { %310 = vrot.lane.b32.xlu1 %v293_v2, %s1192_s26  ;;  %297 = vrot.lane.b32.xlu0 %v293_v2, %s1193_s29  ;;  %v271_v10 = vand.u32 15, %v1361_v8  ;;  %vm284_vm5 = vcmp.eq.s32.totalorder %v264_v9, 0  ;;  %vm286_vm7 = vcmp.eq.s32.totalorder %v264_v9, 15  ;;  %vm291_vm10 = vcmp.ge.s32.totalorder %v1361_v8, 240  ;;  %s995_s26 = sshll.u32 %s1249_s22, 7  ;;  %s255_s29 = scalar_lea.vmem [#allocation7], %s966_s10 }
  0x4f   : > { %679 = vmatprep.mubr.f32.mxu1 %v1191_v0  ;;  %s878_s24 = sshll.u32 %s255_s29, 4  ;;  %s1197_s23 = smov [#allocation7]   ;;  %s879_s24 = int_to_ptr.vmem [resolvable:$true] %s878_s24 }
  0x50   : > { %vm285_vm4 = vcmp.eq.s32.totalorder %v271_v10, 0  ;;  %vm287_vm6 = vcmp.eq.s32.totalorder %v271_v10, 15  ;;  %s1117_s17 = scalar_lea.vmem %s879_s24, 128  ;;  %s1121_s22 = sshll.u32 %s1197_s23, 4  ;;  %s1122_s22 = int_to_ptr.vmem [resolvable:$false] %s1121_s22 }
  0x51   : > { %p1118_p8 = scmp.ne.s32.totalorder %s879_s24, %s1117_s17  ;;  %s1123_s10 = scalar_lea.vmem %s1122_s22, 256 }
  0x52   : > { %571 = vperm.xlu0 %1061, %v568_v5   ;;  %p1124_p10 = scmp.lt.s32.totalorder %s879_s24, %s1122_s22  ;;  %p1125_p2 = scmp.lt.s32.totalorder %s1123_s10, %s1117_s17 }
  0x53   : > { %p1119_p11 = pnand %p1118_p8, %p1458_p3 }
  0x54   : > { %p1126_p13 = por %p1125_p2, %p1124_p10 }
  0x55   : > { %p1120_p7 = pneg %p1119_p11 }
  0x57   : > { %p1127_p0 = pnand %p1126_p13, %p1120_p7 }
  0xbc   : > { %v309_v11 = vpop.permute.xlu1 %308  ;;  %v296_v12 = vpop.permute.xlu0 %295 }
  0xc0   : > { %v311_v13 = vpop.permute.xlu1 %310  ;;  %v298_v14 = vpop.permute.xlu0 %297 }
  0xc1   : > { %v314_v15 = vsel %vm312_vm2, %v311_v13, %v309_v11  ;;  %v301_v16 = vsel %vm299_vm3, %v298_v14, %v296_v12  ;;  %v300_v17 = vsel %vm299_vm3, %v296_v12, %v298_v14  ;;  %v313_v18 = vsel %vm312_vm2, %v309_v11, %v311_v13 }
  0xc2   : > { %v307_v19 = vsel %vm285_vm4, 0.0, %v300_v17  ;;  %v306_v20 = vsel %vm284_vm5, 0.0, %v301_v16  ;;  %v320_v22 = vsel %vm287_vm6, 0.0, %v314_v15  ;;  %v319_v23 = vsel %vm286_vm7, 0.0, %v313_v18 }
  0xc3   : > { %969 = vmatprep.subr.msk.mxu0 %vm328_vm0, %v307_v19 }
  0xc4   : > { %970 = vmatpush1.msk.msra.mxu0 %vm328_vm0, %v306_v20 }
  0xc5   : > { %971 = vmatmul.mubr.msk.f32.vlgmr.msra.gmra.mxu0 %vm324_vm1, %v323_v21  ;;  %975 = vmatprep.subr.msk.mxu0 %vm328_vm0, %v320_v22 }
  0xc6   : > { %976 = vmatpush1.msk.msra.mxu0 %vm328_vm0, %v319_v23  ;;  %559 = vmatprep.mubr.f32.mxu0 %v1191_v0 }
  0xc9   : > { %977 = vmatmul.mubr.msk.f32.vlgmr.msra.gmra.mxu0 %vm324_vm1, %v485_v24 }
  0xca   : > { %759 = vmatprep.mubr.f32.mxu0 %v1191_v0 }
  0xcd   : > { %v572_v31 = vpop.permute.xlu0 %571 }
 0x10d   : > { %v479_v25 = vpop.f32.mrf.mxu1 }
 0x10f   : > { %v481_v28 = vpop.f32.mrf.mxu1 }
 0x185   : > { %v401_v26 = vpop.f32.mrf.mxu0 }
 0x186   : > { %v480_v29 = vadd.f32 %v479_v25, %v401_v26 }
 0x187   : > { %v403_v27 = vpop.f32.mrf.mxu0 }
 0x188   : > { %v482_v32 = vadd.f32 %v481_v28, %v403_v27 }
 0x189   : > { %v561_v30 = vpop.f32.mrf.mxu0 }
 0x18a   : > { %v566_v33 = vadd.f32 %v561_v30, %v480_v29 }
 0x18b   : > { %v563_v34 = vpop.f32.mrf.mxu0 }
 0x18c   : > { %v567_v35 = vadd.f32 %v563_v34, %v482_v32  ;;  %v574_v36 = vadd.f32 %v572_v31, %v566_v33 }
 0x18e   : > { %v575_v37 = vadd.f32 %v572_v31, %v567_v35  ;;  %v576_v38 = vmax.f32 %v574_v36, 0.0 }
 0x190   : > { %v577_v39 = vmax.f32 %v575_v37, 0.0  ;;  %590 = vrot.lane.b32.xlu0 %v576_v38, %s1195_s7  ;;  %578 = vrot.lane.b32.xlu1 %v576_v38, %s1196_s8 }
 0x192   : > { %982 = vmatprep.subr.msk.mxu0 %vm328_vm0, %v577_v39 }
 0x193   : > { %983 = vmatpush1.msk.msra.mxu0 %vm328_vm0, %v576_v38 }
 0x194   : > { %853 = vperm.xlu0 %1061, %v850_v40   ;;  %580 = vrot.lane.b32.xlu1 %v577_v39, %s1196_s8  ;;  %s876_s8 = scalar_lea.hbm %s1442_s5, %s995_s26 }
 0x195   : > { %984 = vmatmul.mubr.msk.f32.vlgmr.msra.gmra.mxu0 %vm324_vm1, %v978_v41 }
 0x198   : > { %592 = vrot.lane.b32.xlu1 %v577_v39, %s1195_s7 }
 0x202   : > { %v579_v42 = vpop.permute.xlu1 %578  ;;  %v591_v48 = vpop.permute.xlu0 %590 }
 0x206   : > { %v581_v43 = vpop.permute.xlu1 %580 }
 0x207   : > { %v582_v44 = vsel %vm288_vm8, %v579_v42, %v581_v43  ;;  %v583_v45 = vsel %vm288_vm8, %v581_v43, %v579_v42 }
 0x208   : > { %v588_v47 = vsel %vm288_vm8, 0.0, %v583_v45  ;;  %979 = vmatprep.subr.msk.mxu1 %vm328_vm0, %v582_v44 }
 0x209   : > { %980 = vmatpush1.msk.msra.mxu1 %vm328_vm0, %v588_v47 }
 0x20a   : > { %v593_v49 = vpop.permute.xlu1 %592  ;;  %981 = vmatmul.mubr.msk.f32.vlgmr.msra.gmra.mxu1 %vm324_vm1, %v605_v46 }
 0x20b   : > { %v596_v50 = vsel %vm594_vm9, %v593_v49, %v591_v48  ;;  %841 = vmatprep.mubr.f32.mxu1 %v1191_v0  ;;  %v595_v53 = vsel %vm594_vm9, %v591_v48, %v593_v49 }
 0x20c   : > { %v602_v51 = vsel %vm291_vm10, 0.0, %v596_v50 }
 0x20d   : > { %986 = vmatprep.subr.msk.mxu1 %vm328_vm0, %v602_v51 }
 0x20e   : > { %987 = vmatpush1.msk.msra.mxu1 %vm328_vm0, %v595_v53 }
 0x20f   : > { %988 = vmatmul.mubr.msk.f32.vlgmr.msra.gmra.mxu1 %vm324_vm1, %v985_v52  ;;  %v854_v0 = vpop.permute.xlu0 %853 }
 0x255   : > { %v761_v54 = vpop.f32.mrf.mxu0 }
 0x257   : > { %v763_v57 = vpop.f32.mrf.mxu0 }
 0x2ca   : > { %v681_v55 = vpop.f32.mrf.mxu1 }
 0x2cb   : > { %v762_v58 = vadd.f32 %v761_v54, %v681_v55 }
 0x2cc   : > { %v683_v56 = vpop.f32.mrf.mxu1 }
 0x2cd   : > { %v764_v60 = vadd.f32 %v763_v57, %v683_v56 }
 0x2cf   : > { %v843_v59 = vpop.f32.mrf.mxu1 }
 0x2d0   : > { %v848_v61 = vadd.f32 %v843_v59, %v762_v58 }
 0x2d1   : > { %v845_v62 = vpop.f32.mrf.mxu1 }
 0x2d2   : > { %v849_v63 = vadd.f32 %v845_v62, %v764_v60  ;;  %v856_v1 = vadd.f32 %v854_v0, %v848_v61 }
 0x2d4   : > { %v857_v2 = vadd.f32 %v854_v0, %v849_v63 }
 0x2d6   : > { %v860_v3 = vcombine.low %v856_v1, %v857_v2 }
 0x2d8   : > { %862 = vst [vmem:[%s255_s29] sm:$0xff] %v860_v3 }
 0x2d9   : > { %1130 = shalt.err (!%p1127_p0)
}
 0x2da   : > { %s1131_s15 = scalar_lea.hbm %s876_s8, 128  ;;  %s1135_s28 = scalar_lea.hbm %s1442_s5, 256 }
 0x2db   : > { %p1132_p5 = scmp.ne.s32.totalorder %s876_s8, %s1131_s15  ;;  %p1136_p1 = scmp.lt.s32.totalorder %s876_s8, %s1442_s5 }
 0x2dc   : > { %p1137_p4 = scmp.lt.s32.totalorder %s1135_s28, %s1131_s15 }
 0x2dd   : > { %p1133_p9 = pnand %p1132_p5, %p1458_p3 }
 0x2de   : > { %p1138_p6 = por %p1137_p4, %p1136_p1 }
 0x2df   : > { %p1134_p12 = pneg %p1133_p9 }
 0x2e1   : > { %p1139_p8 = pnand %p1138_p6, %p1134_p12 }
 0x2e3   : > { %1142 = shalt.err (!%p1139_p8)
}
 0x2e4   : > { %1002 = dma.vmem_to_hbm [thread:$0]  (%p1458_p3), %s879_s24, 128, %s876_s8, %s864_s16  }
 0x2e5 PF: > { %s890_s26 = sand.u32 1, %s1173_s18   ;;  %p1459_p11 = scmp.ne.s32.totalorder %s1448_s25, 0 }
 0x2e6   : > { %p1460_p7 = scmp.ge.s32.totalorder %s1185_s21, 2  ;;  %s891_s29 = scalar_lea.sflag [#allocation4], %s890_s26 }
 0x2e8   : > { %p1013_p10 = pnand %p1460_p7, %p1459_p11 }
 0x2ea   : > { %p1014_p2 = pneg %p1013_p10 }
 0x2ec   : > { %1168 = dma.done.wait (%p1014_p2), %s891_s29, 128  }
 0x2ed   : > { %1170 = vsyncadd (%p1014_p2), %s891_s29, 4294967168  ;;  %p19_p13 = scmp.ge.s32.totalorder %s1282_s30, 4   ;;  %s1461_s18 = smov %s1177_s19 }
 0x2ee   : > { %s1462_s19 = smov %s1181_s20  ;;  %s1463_s20 = smov %s1299_s13 }
 0x2ef   : > { %s1464_s21 = smov %s1282_s30  ;;  %21 = sbr.rel (!%p19_p13) target bundleno = 6 (0x6), region = 93 }
 0x2f4   :  { %896 = vsyncpa [#allocation3], 1 }
 0x2f5   :  { %898 = vsyncpa [#allocation3 + $0x1], 1 }
 0x2f6   :  { %899 = vsyncpa [#allocation6], 1 }
 0x2f7   :  { %900 = vsyncpa [#allocation4], 1 }
 0x2f8   :  { %902 = vsyncpa [#allocation4 + $0x1], 1 }

</bundles_post_ra>
